<compile_context>
chip_gen: v5e
topology: v5e:2x2
jax: 0.10.0
libtpu: 0.0.40
codegen_flags: <defaults>
</compile_context>

<pallas_src>
import jax
import jax.numpy as jnp
from jax import lax
from jax.experimental import pallas as pl
from jax.experimental.pallas import tpu as pltpu


def gru_encoder_kernel(seq_ref, table_ref, w_zr_ref, w_h_ref, o_ref):
    """GRU recurrence, fully fused (gather + gates + blend) on one TC.

    seq_ref   : (T,)        int32, SMEM (scalar prefetch) — token ids
    table_ref : (V_pad, L)  f32, VMEM — per-token packed row:
                lanes [0:2H)   = [Wz_x x | Wr_x x]
                lanes [2H:3H)  =  Wc_x x
                lanes [3H:L)   =  zero pad (L multiple of 128)
    w_zr_ref  : (H, 2H)     f32, VMEM — fused [Wz_h^T | Wr_h^T]
    w_h_ref   : (2H, H)     f32, VMEM — [0 ; Wc_h^T] (top H rows zero)
    o_ref     : (1, H)      f32, VMEM — final hidden state
    """
    T = seq_ref.shape[0]
    H = o_ref.shape[1]

    # Hoist loop-invariant weights: loaded once, live in vregs across steps.
    w_zr = w_zr_ref[...]            # (H, 2H)
    w_h = w_h_ref[...]              # (2H, H)

    def step(t, h):                 # h: (1, H) f32
        tok = seq_ref[t]                                   # SMEM scalar read
        row = table_ref[pl.ds(tok, 1), :]                  # (1, L) one vld
        x_zr = row[:, : 2 * H]                             # (1, 2H)
        x_c = row[:, 2 * H: 3 * H]                         # (1, H)

        # Gate dot (MXU) + sigmoid (EUP): zr = [z | r]   (1, 2H)
        zr = jax.nn.sigmoid(
            x_zr + jnp.dot(h, w_zr, preferred_element_type=jnp.float32))

        # [h | h]: off the effective critical path (overlaps gate dot+sigmoid)
        hh = jnp.concatenate([h, h], axis=1)               # (1, 2H)
        zr_h = zr * hh                                      # [z*h | r*h]

        # Candidate dot: (1,2H)@(2H,H) — top half hits zero rows, so this is
        # exactly Wc_h @ (r*h) with no lane relayout of r.
        h_tilde = jnp.tanh(
            x_c + jnp.dot(zr_h, w_h, preferred_element_type=jnp.float32))

        # h_t = z*h + (1 - z)*h_tilde ; z*h reused from zr_h (lanes 0..H-1).
        z = zr[:, :H]
        return zr_h[:, :H] + (1.0 - z) * h_tilde

    h0 = jnp.zeros((1, H), dtype=jnp.float32)
    o_ref[...] = lax.fori_loop(0, T, step, h0, unroll=True)


def init_params(key, vocab_size, embedding_dim, hidden_size):
    """Deterministic synthetic parameters with PyTorch-like shapes."""
    ks = jax.random.split(key, 7)
    embedding = jax.random.normal(ks[0], (vocab_size, embedding_dim),
                                  dtype=jnp.float32)

    def linear_w(k, out_f, in_f):
        # nn.Linear(bias=False) weight: (out_features, in_features)
        bound = 1.0 / jnp.sqrt(jnp.float32(in_f))
        return jax.random.uniform(k, (out_f, in_f), jnp.float32, -bound, bound)

    return {
        "embedding": embedding,
        "update_wx": linear_w(ks[1], hidden_size, embedding_dim),
        "update_wh": linear_w(ks[2], hidden_size, hidden_size),
        "reset_wx":  linear_w(ks[3], hidden_size, embedding_dim),
        "reset_wh":  linear_w(ks[4], hidden_size, hidden_size),
        "cand_wx":   linear_w(ks[5], hidden_size, embedding_dim),
        "cand_wh":   linear_w(ks[6], hidden_size, hidden_size),
    }


def prepare_encoder_params(params):
    """One-time weight prep: fold embedding@Wx, fuse gates, lane-pack table."""
    emb = params["embedding"].astype(jnp.float32)                  # (V, E)
    V = emb.shape[0]
    H = params["cand_wh"].shape[0]

    # x-side projections folded into the embedding table (zero x-matmuls
    # on the forward path).
    x_zr = emb @ jnp.concatenate([params["update_wx"].T,
                                  params["reset_wx"].T], axis=1)   # (V, 2H)
    x_c = emb @ params["cand_wx"].T                                # (V, H)

    # Lane-dense packed table: [x_zr | x_c | pad] padded to a 128-lane
    # multiple and to 8 sublanes.
    lanes = ((3 * H + 127) // 128) * 128
    v_pad = ((V + 7) // 8) * 8
    table = jnp.zeros((v_pad, lanes), jnp.float32)
    table = table.at[:V, : 2 * H].set(x_zr)
    table = table.at[:V, 2 * H: 3 * H].set(x_c)

    # Fused hidden-state gate weight [Wz_h^T | Wr_h^T], pre-transposed.
    w_zr = jnp.concatenate([params["update_wh"].T,
                            params["reset_wh"].T], axis=1)         # (H, 2H)

    # Candidate weight zero-padded so the dot consumes [z*h | r*h] directly.
    w_h = jnp.concatenate([jnp.zeros((H, H), jnp.float32),
                           params["cand_wh"].T], axis=0)           # (2H, H)

    return {"table": table, "w_zr": w_zr, "w_h": w_h}


@jax.jit
def rnn_encoder_forward(input_seq, kparams):
    """Pallas-backed forward pass. Returns final hidden state (H,)."""
    H = kparams["w_zr"].shape[0]

    out = pl.pallas_call(
        gru_encoder_kernel,
        out_shape=jax.ShapeDtypeStruct((1, H), jnp.float32),
        grid_spec=pltpu.PrefetchScalarGridSpec(
            num_scalar_prefetch=1,          # input_seq -> SMEM
            grid=(1,),
            in_specs=[
                pl.BlockSpec(memory_space=pltpu.MemorySpace.VMEM),  # table
                pl.BlockSpec(memory_space=pltpu.MemorySpace.VMEM),  # w_zr
                pl.BlockSpec(memory_space=pltpu.MemorySpace.VMEM),  # w_h
            ],
            out_specs=pl.BlockSpec(memory_space=pltpu.MemorySpace.VMEM),
        ),
        compiler_params=pltpu.CompilerParams(
            dimension_semantics=("arbitrary",)),
    )(input_seq.astype(jnp.int32), kparams["table"], kparams["w_zr"],
      kparams["w_h"])

    return out[0]                           # (H,)


def rnn_encoder_reference(input_seq, params):
    """Pure-JAX reference matching PyTorch RNNEncoder.forward exactly."""
    emb = params["embedding"]
    H = params["cand_wh"].shape[0]
    h = jnp.zeros((H,), dtype=jnp.float32)
    for t in range(input_seq.shape[0]):
        x = emb[input_seq[t]]
        z = jax.nn.sigmoid(params["update_wx"] @ x + params["update_wh"] @ h)
        r = jax.nn.sigmoid(params["reset_wx"] @ x + params["reset_wh"] @ h)
        h_tilde = jnp.tanh(params["cand_wx"] @ x + params["cand_wh"] @ (r * h))
        h = z * h + (1.0 - z) * h_tilde
    return h


if __name__ == "__main__":
    VOCAB_SIZE = 50
    EMBEDDING_DIM = 16
    HIDDEN_SIZE = 32
    SEQ_LEN = 8

    key = jax.random.PRNGKey(0)
    k_params, k_seq = jax.random.split(key)

    params = init_params(k_params, VOCAB_SIZE, EMBEDDING_DIM, HIDDEN_SIZE)
    kparams = prepare_encoder_params(params)     # one-time fold/fuse/pack
    input_seq = jax.random.randint(k_seq, (SEQ_LEN,), 0, VOCAB_SIZE,
                                   dtype=jnp.int32)

    h_kernel = jax.block_until_ready(rnn_encoder_forward(input_seq, kparams))
    h_ref = jax.block_until_ready(rnn_encoder_reference(input_seq, params))

    assert h_kernel.shape == (HIDDEN_SIZE,)
    assert jnp.allclose(h_kernel, h_ref, rtol=1e-4, atol=1e-4), (
        f"mismatch: max abs err = {jnp.max(jnp.abs(h_kernel - h_ref))}")

    print("KERNEL_OK")
</pallas_src>

<mosaic_0001>
module attributes {stable_mosaic.version = 11 : i64} {
  func.func @gru_encoder_kernel(%arg0: i32, %arg1: memref<8xi32, #tpu.memory_space<smem>>, %arg2: memref<56x128xf32, #tpu.memory_space<vmem>>, %arg3: memref<32x64xf32, #tpu.memory_space<vmem>>, %arg4: memref<64x32xf32, #tpu.memory_space<vmem>>, %arg5: memref<1x32xf32, #tpu.memory_space<vmem>>) attributes {dimension_semantics = [#tpu.dimension_semantics<arbitrary>], iteration_bounds = array<i64: 1>, scalar_prefetch = 1 : i64, scratch_operands = 0 : i64, tpu.core_type = #tpu.core_type<tc>, window_params = [{pipeline_mode = #tpu.pipeline_mode<synchronous>, transform_indices = @transform_0, window_bounds = array<i64: 56, 128>}, {pipeline_mode = #tpu.pipeline_mode<synchronous>, transform_indices = @transform_1, window_bounds = array<i64: 32, 64>}, {pipeline_mode = #tpu.pipeline_mode<synchronous>, transform_indices = @transform_2, window_bounds = array<i64: 64, 32>}, {pipeline_mode = #tpu.pipeline_mode<synchronous>, transform_indices = @transform_3, window_bounds = array<i64: 1, 32>}]} {
    %c0 = arith.constant 0 : index
    %c0_0 = arith.constant 0 : index
    %0 = vector.load %arg3[%c0, %c0_0] : memref<32x64xf32, #tpu.memory_space<vmem>>, vector<32x64xf32>
    %c0_1 = arith.constant 0 : index
    %c0_2 = arith.constant 0 : index
    %1 = vector.load %arg4[%c0_1, %c0_2] : memref<64x32xf32, #tpu.memory_space<vmem>>, vector<64x32xf32>
    %cst = arith.constant 0.000000e+00 : f32
    %2 = vector.broadcast %cst : f32 to vector<1x32xf32>
    %c0_i32 = arith.constant 0 : i32
    %3 = arith.index_cast %c0_i32 : i32 to index
    %4 = memref.load %arg1[%3] : memref<8xi32, #tpu.memory_space<smem>>
    %5 = arith.index_cast %4 : i32 to index
    %c0_3 = arith.constant 0 : index
    %6 = vector.load %arg2[%5, %c0_3] : memref<56x128xf32, #tpu.memory_space<vmem>>, vector<1x128xf32>
    %7 = vector.extract_strided_slice %6 {offsets = [0, 0], sizes = [1, 64], strides = [1, 1]} : vector<1x128xf32> to vector<1x64xf32>
    %8 = vector.extract_strided_slice %6 {offsets = [0, 64], sizes = [1, 32], strides = [1, 1]} : vector<1x128xf32> to vector<1x32xf32>
    %cst_4 = arith.constant dense<0.000000e+00> : vector<1x64xf32>
    %9 = tpu.matmul %2, %0, %cst_4 {dimension_numbers = #tpu.dot_dimension_numbers<[1], [0], [0], [1], [0, 0, 1, 1], [], []>} : vector<1x32xf32>, vector<32x64xf32>, vector<1x64xf32> -> vector<1x64xf32>
    %10 = arith.addf %7, %9 : vector<1x64xf32>
    %11 = arith.negf %10 : vector<1x64xf32>
    %12 = math.exp %11 : vector<1x64xf32>
    %cst_5 = arith.constant 1.000000e+00 : f32
    %13 = vector.broadcast %cst_5 : f32 to vector<1x64xf32>
    %14 = arith.addf %13, %12 : vector<1x64xf32>
    %15 = arith.divf %13, %14 : vector<1x64xf32>
    %16 = tpu.concatenate %2, %2 in 1 : vector<1x32xf32>, vector<1x32xf32> -> vector<1x64xf32>
    %17 = arith.mulf %15, %16 : vector<1x64xf32>
    %cst_6 = arith.constant dense<0.000000e+00> : vector<1x32xf32>
    %18 = tpu.matmul %17, %1, %cst_6 {dimension_numbers = #tpu.dot_dimension_numbers<[1], [0], [0], [1], [0, 0, 1, 1], [], []>} : vector<1x64xf32>, vector<64x32xf32>, vector<1x32xf32> -> vector<1x32xf32>
    %19 = arith.addf %8, %18 : vector<1x32xf32>
    %20 = math.tanh %19 : vector<1x32xf32>
    %21 = vector.extract_strided_slice %15 {offsets = [0, 0], sizes = [1, 32], strides = [1, 1]} : vector<1x64xf32> to vector<1x32xf32>
    %22 = vector.extract_strided_slice %17 {offsets = [0, 0], sizes = [1, 32], strides = [1, 1]} : vector<1x64xf32> to vector<1x32xf32>
    %cst_7 = arith.constant 1.000000e+00 : f32
    %23 = vector.broadcast %cst_7 : f32 to vector<1x32xf32>
    %24 = arith.subf %23, %21 : vector<1x32xf32>
    %25 = arith.mulf %24, %20 : vector<1x32xf32>
    %26 = arith.addf %22, %25 : vector<1x32xf32>
    %c1_i32 = arith.constant 1 : i32
    %27 = arith.index_cast %c1_i32 : i32 to index
    %28 = memref.load %arg1[%27] : memref<8xi32, #tpu.memory_space<smem>>
    %29 = arith.index_cast %28 : i32 to index
    %c0_8 = arith.constant 0 : index
    %30 = vector.load %arg2[%29, %c0_8] : memref<56x128xf32, #tpu.memory_space<vmem>>, vector<1x128xf32>
    %31 = vector.extract_strided_slice %30 {offsets = [0, 0], sizes = [1, 64], strides = [1, 1]} : vector<1x128xf32> to vector<1x64xf32>
    %32 = vector.extract_strided_slice %30 {offsets = [0, 64], sizes = [1, 32], strides = [1, 1]} : vector<1x128xf32> to vector<1x32xf32>
    %cst_9 = arith.constant dense<0.000000e+00> : vector<1x64xf32>
    %33 = tpu.matmul %26, %0, %cst_9 {dimension_numbers = #tpu.dot_dimension_numbers<[1], [0], [0], [1], [0, 0, 1, 1], [], []>} : vector<1x32xf32>, vector<32x64xf32>, vector<1x64xf32> -> vector<1x64xf32>
    %34 = arith.addf %31, %33 : vector<1x64xf32>
    %35 = arith.negf %34 : vector<1x64xf32>
    %36 = math.exp %35 : vector<1x64xf32>
    %cst_10 = arith.constant 1.000000e+00 : f32
    %37 = vector.broadcast %cst_10 : f32 to vector<1x64xf32>
    %38 = arith.addf %37, %36 : vector<1x64xf32>
    %39 = arith.divf %37, %38 : vector<1x64xf32>
    %40 = tpu.concatenate %26, %26 in 1 : vector<1x32xf32>, vector<1x32xf32> -> vector<1x64xf32>
    %41 = arith.mulf %39, %40 : vector<1x64xf32>
    %cst_11 = arith.constant dense<0.000000e+00> : vector<1x32xf32>
    %42 = tpu.matmul %41, %1, %cst_11 {dimension_numbers = #tpu.dot_dimension_numbers<[1], [0], [0], [1], [0, 0, 1, 1], [], []>} : vector<1x64xf32>, vector<64x32xf32>, vector<1x32xf32> -> vector<1x32xf32>
    %43 = arith.addf %32, %42 : vector<1x32xf32>
    %44 = math.tanh %43 : vector<1x32xf32>
    %45 = vector.extract_strided_slice %39 {offsets = [0, 0], sizes = [1, 32], strides = [1, 1]} : vector<1x64xf32> to vector<1x32xf32>
    %46 = vector.extract_strided_slice %41 {offsets = [0, 0], sizes = [1, 32], strides = [1, 1]} : vector<1x64xf32> to vector<1x32xf32>
    %cst_12 = arith.constant 1.000000e+00 : f32
    %47 = vector.broadcast %cst_12 : f32 to vector<1x32xf32>
    %48 = arith.subf %47, %45 : vector<1x32xf32>
    %49 = arith.mulf %48, %44 : vector<1x32xf32>
    %50 = arith.addf %46, %49 : vector<1x32xf32>
    %c2_i32 = arith.constant 2 : i32
    %51 = arith.index_cast %c2_i32 : i32 to index
    %52 = memref.load %arg1[%51] : memref<8xi32, #tpu.memory_space<smem>>
    %53 = arith.index_cast %52 : i32 to index
    %c0_13 = arith.constant 0 : index
    %54 = vector.load %arg2[%53, %c0_13] : memref<56x128xf32, #tpu.memory_space<vmem>>, vector<1x128xf32>
    %55 = vector.extract_strided_slice %54 {offsets = [0, 0], sizes = [1, 64], strides = [1, 1]} : vector<1x128xf32> to vector<1x64xf32>
    %56 = vector.extract_strided_slice %54 {offsets = [0, 64], sizes = [1, 32], strides = [1, 1]} : vector<1x128xf32> to vector<1x32xf32>
    %cst_14 = arith.constant dense<0.000000e+00> : vector<1x64xf32>
    %57 = tpu.matmul %50, %0, %cst_14 {dimension_numbers = #tpu.dot_dimension_numbers<[1], [0], [0], [1], [0, 0, 1, 1], [], []>} : vector<1x32xf32>, vector<32x64xf32>, vector<1x64xf32> -> vector<1x64xf32>
    %58 = arith.addf %55, %57 : vector<1x64xf32>
    %59 = arith.negf %58 : vector<1x64xf32>
    %60 = math.exp %59 : vector<1x64xf32>
    %cst_15 = arith.constant 1.000000e+00 : f32
    %61 = vector.broadcast %cst_15 : f32 to vector<1x64xf32>
    %62 = arith.addf %61, %60 : vector<1x64xf32>
    %63 = arith.divf %61, %62 : vector<1x64xf32>
    %64 = tpu.concatenate %50, %50 in 1 : vector<1x32xf32>, vector<1x32xf32> -> vector<1x64xf32>
    %65 = arith.mulf %63, %64 : vector<1x64xf32>
    %cst_16 = arith.constant dense<0.000000e+00> : vector<1x32xf32>
    %66 = tpu.matmul %65, %1, %cst_16 {dimension_numbers = #tpu.dot_dimension_numbers<[1], [0], [0], [1], [0, 0, 1, 1], [], []>} : vector<1x64xf32>, vector<64x32xf32>, vector<1x32xf32> -> vector<1x32xf32>
    %67 = arith.addf %56, %66 : vector<1x32xf32>
    %68 = math.tanh %67 : vector<1x32xf32>
    %69 = vector.extract_strided_slice %63 {offsets = [0, 0], sizes = [1, 32], strides = [1, 1]} : vector<1x64xf32> to vector<1x32xf32>
    %70 = vector.extract_strided_slice %65 {offsets = [0, 0], sizes = [1, 32], strides = [1, 1]} : vector<1x64xf32> to vector<1x32xf32>
    %cst_17 = arith.constant 1.000000e+00 : f32
    %71 = vector.broadcast %cst_17 : f32 to vector<1x32xf32>
    %72 = arith.subf %71, %69 : vector<1x32xf32>
    %73 = arith.mulf %72, %68 : vector<1x32xf32>
    %74 = arith.addf %70, %73 : vector<1x32xf32>
    %c3_i32 = arith.constant 3 : i32
    %75 = arith.index_cast %c3_i32 : i32 to index
    %76 = memref.load %arg1[%75] : memref<8xi32, #tpu.memory_space<smem>>
    %77 = arith.index_cast %76 : i32 to index
    %c0_18 = arith.constant 0 : index
    %78 = vector.load %arg2[%77, %c0_18] : memref<56x128xf32, #tpu.memory_space<vmem>>, vector<1x128xf32>
    %79 = vector.extract_strided_slice %78 {offsets = [0, 0], sizes = [1, 64], strides = [1, 1]} : vector<1x128xf32> to vector<1x64xf32>
    %80 = vector.extract_strided_slice %78 {offsets = [0, 64], sizes = [1, 32], strides = [1, 1]} : vector<1x128xf32> to vector<1x32xf32>
    %cst_19 = arith.constant dense<0.000000e+00> : vector<1x64xf32>
    %81 = tpu.matmul %74, %0, %cst_19 {dimension_numbers = #tpu.dot_dimension_numbers<[1], [0], [0], [1], [0, 0, 1, 1], [], []>} : vector<1x32xf32>, vector<32x64xf32>, vector<1x64xf32> -> vector<1x64xf32>
    %82 = arith.addf %79, %81 : vector<1x64xf32>
    %83 = arith.negf %82 : vector<1x64xf32>
    %84 = math.exp %83 : vector<1x64xf32>
    %cst_20 = arith.constant 1.000000e+00 : f32
    %85 = vector.broadcast %cst_20 : f32 to vector<1x64xf32>
    %86 = arith.addf %85, %84 : vector<1x64xf32>
    %87 = arith.divf %85, %86 : vector<1x64xf32>
    %88 = tpu.concatenate %74, %74 in 1 : vector<1x32xf32>, vector<1x32xf32> -> vector<1x64xf32>
    %89 = arith.mulf %87, %88 : vector<1x64xf32>
    %cst_21 = arith.constant dense<0.000000e+00> : vector<1x32xf32>
    %90 = tpu.matmul %89, %1, %cst_21 {dimension_numbers = #tpu.dot_dimension_numbers<[1], [0], [0], [1], [0, 0, 1, 1], [], []>} : vector<1x64xf32>, vector<64x32xf32>, vector<1x32xf32> -> vector<1x32xf32>
    %91 = arith.addf %80, %90 : vector<1x32xf32>
    %92 = math.tanh %91 : vector<1x32xf32>
    %93 = vector.extract_strided_slice %87 {offsets = [0, 0], sizes = [1, 32], strides = [1, 1]} : vector<1x64xf32> to vector<1x32xf32>
    %94 = vector.extract_strided_slice %89 {offsets = [0, 0], sizes = [1, 32], strides = [1, 1]} : vector<1x64xf32> to vector<1x32xf32>
    %cst_22 = arith.constant 1.000000e+00 : f32
    %95 = vector.broadcast %cst_22 : f32 to vector<1x32xf32>
    %96 = arith.subf %95, %93 : vector<1x32xf32>
    %97 = arith.mulf %96, %92 : vector<1x32xf32>
    %98 = arith.addf %94, %97 : vector<1x32xf32>
    %c4_i32 = arith.constant 4 : i32
    %99 = arith.index_cast %c4_i32 : i32 to index
    %100 = memref.load %arg1[%99] : memref<8xi32, #tpu.memory_space<smem>>
    %101 = arith.index_cast %100 : i32 to index
    %c0_23 = arith.constant 0 : index
    %102 = vector.load %arg2[%101, %c0_23] : memref<56x128xf32, #tpu.memory_space<vmem>>, vector<1x128xf32>
    %103 = vector.extract_strided_slice %102 {offsets = [0, 0], sizes = [1, 64], strides = [1, 1]} : vector<1x128xf32> to vector<1x64xf32>
    %104 = vector.extract_strided_slice %102 {offsets = [0, 64], sizes = [1, 32], strides = [1, 1]} : vector<1x128xf32> to vector<1x32xf32>
    %cst_24 = arith.constant dense<0.000000e+00> : vector<1x64xf32>
    %105 = tpu.matmul %98, %0, %cst_24 {dimension_numbers = #tpu.dot_dimension_numbers<[1], [0], [0], [1], [0, 0, 1, 1], [], []>} : vector<1x32xf32>, vector<32x64xf32>, vector<1x64xf32> -> vector<1x64xf32>
    %106 = arith.addf %103, %105 : vector<1x64xf32>
    %107 = arith.negf %106 : vector<1x64xf32>
    %108 = math.exp %107 : vector<1x64xf32>
    %cst_25 = arith.constant 1.000000e+00 : f32
    %109 = vector.broadcast %cst_25 : f32 to vector<1x64xf32>
    %110 = arith.addf %109, %108 : vector<1x64xf32>
    %111 = arith.divf %109, %110 : vector<1x64xf32>
    %112 = tpu.concatenate %98, %98 in 1 : vector<1x32xf32>, vector<1x32xf32> -> vector<1x64xf32>
    %113 = arith.mulf %111, %112 : vector<1x64xf32>
    %cst_26 = arith.constant dense<0.000000e+00> : vector<1x32xf32>
    %114 = tpu.matmul %113, %1, %cst_26 {dimension_numbers = #tpu.dot_dimension_numbers<[1], [0], [0], [1], [0, 0, 1, 1], [], []>} : vector<1x64xf32>, vector<64x32xf32>, vector<1x32xf32> -> vector<1x32xf32>
    %115 = arith.addf %104, %114 : vector<1x32xf32>
    %116 = math.tanh %115 : vector<1x32xf32>
    %117 = vector.extract_strided_slice %111 {offsets = [0, 0], sizes = [1, 32], strides = [1, 1]} : vector<1x64xf32> to vector<1x32xf32>
    %118 = vector.extract_strided_slice %113 {offsets = [0, 0], sizes = [1, 32], strides = [1, 1]} : vector<1x64xf32> to vector<1x32xf32>
    %cst_27 = arith.constant 1.000000e+00 : f32
    %119 = vector.broadcast %cst_27 : f32 to vector<1x32xf32>
    %120 = arith.subf %119, %117 : vector<1x32xf32>
    %121 = arith.mulf %120, %116 : vector<1x32xf32>
    %122 = arith.addf %118, %121 : vector<1x32xf32>
    %c5_i32 = arith.constant 5 : i32
    %123 = arith.index_cast %c5_i32 : i32 to index
    %124 = memref.load %arg1[%123] : memref<8xi32, #tpu.memory_space<smem>>
    %125 = arith.index_cast %124 : i32 to index
    %c0_28 = arith.constant 0 : index
    %126 = vector.load %arg2[%125, %c0_28] : memref<56x128xf32, #tpu.memory_space<vmem>>, vector<1x128xf32>
    %127 = vector.extract_strided_slice %126 {offsets = [0, 0], sizes = [1, 64], strides = [1, 1]} : vector<1x128xf32> to vector<1x64xf32>
    %128 = vector.extract_strided_slice %126 {offsets = [0, 64], sizes = [1, 32], strides = [1, 1]} : vector<1x128xf32> to vector<1x32xf32>
    %cst_29 = arith.constant dense<0.000000e+00> : vector<1x64xf32>
    %129 = tpu.matmul %122, %0, %cst_29 {dimension_numbers = #tpu.dot_dimension_numbers<[1], [0], [0], [1], [0, 0, 1, 1], [], []>} : vector<1x32xf32>, vector<32x64xf32>, vector<1x64xf32> -> vector<1x64xf32>
    %130 = arith.addf %127, %129 : vector<1x64xf32>
    %131 = arith.negf %130 : vector<1x64xf32>
    %132 = math.exp %131 : vector<1x64xf32>
    %cst_30 = arith.constant 1.000000e+00 : f32
    %133 = vector.broadcast %cst_30 : f32 to vector<1x64xf32>
    %134 = arith.addf %133, %132 : vector<1x64xf32>
    %135 = arith.divf %133, %134 : vector<1x64xf32>
    %136 = tpu.concatenate %122, %122 in 1 : vector<1x32xf32>, vector<1x32xf32> -> vector<1x64xf32>
    %137 = arith.mulf %135, %136 : vector<1x64xf32>
    %cst_31 = arith.constant dense<0.000000e+00> : vector<1x32xf32>
    %138 = tpu.matmul %137, %1, %cst_31 {dimension_numbers = #tpu.dot_dimension_numbers<[1], [0], [0], [1], [0, 0, 1, 1], [], []>} : vector<1x64xf32>, vector<64x32xf32>, vector<1x32xf32> -> vector<1x32xf32>
    %139 = arith.addf %128, %138 : vector<1x32xf32>
    %140 = math.tanh %139 : vector<1x32xf32>
    %141 = vector.extract_strided_slice %135 {offsets = [0, 0], sizes = [1, 32], strides = [1, 1]} : vector<1x64xf32> to vector<1x32xf32>
    %142 = vector.extract_strided_slice %137 {offsets = [0, 0], sizes = [1, 32], strides = [1, 1]} : vector<1x64xf32> to vector<1x32xf32>
    %cst_32 = arith.constant 1.000000e+00 : f32
    %143 = vector.broadcast %cst_32 : f32 to vector<1x32xf32>
    %144 = arith.subf %143, %141 : vector<1x32xf32>
    %145 = arith.mulf %144, %140 : vector<1x32xf32>
    %146 = arith.addf %142, %145 : vector<1x32xf32>
    %c6_i32 = arith.constant 6 : i32
    %147 = arith.index_cast %c6_i32 : i32 to index
    %148 = memref.load %arg1[%147] : memref<8xi32, #tpu.memory_space<smem>>
    %149 = arith.index_cast %148 : i32 to index
    %c0_33 = arith.constant 0 : index
    %150 = vector.load %arg2[%149, %c0_33] : memref<56x128xf32, #tpu.memory_space<vmem>>, vector<1x128xf32>
    %151 = vector.extract_strided_slice %150 {offsets = [0, 0], sizes = [1, 64], strides = [1, 1]} : vector<1x128xf32> to vector<1x64xf32>
    %152 = vector.extract_strided_slice %150 {offsets = [0, 64], sizes = [1, 32], strides = [1, 1]} : vector<1x128xf32> to vector<1x32xf32>
    %cst_34 = arith.constant dense<0.000000e+00> : vector<1x64xf32>
    %153 = tpu.matmul %146, %0, %cst_34 {dimension_numbers = #tpu.dot_dimension_numbers<[1], [0], [0], [1], [0, 0, 1, 1], [], []>} : vector<1x32xf32>, vector<32x64xf32>, vector<1x64xf32> -> vector<1x64xf32>
    %154 = arith.addf %151, %153 : vector<1x64xf32>
    %155 = arith.negf %154 : vector<1x64xf32>
    %156 = math.exp %155 : vector<1x64xf32>
    %cst_35 = arith.constant 1.000000e+00 : f32
    %157 = vector.broadcast %cst_35 : f32 to vector<1x64xf32>
    %158 = arith.addf %157, %156 : vector<1x64xf32>
    %159 = arith.divf %157, %158 : vector<1x64xf32>
    %160 = tpu.concatenate %146, %146 in 1 : vector<1x32xf32>, vector<1x32xf32> -> vector<1x64xf32>
    %161 = arith.mulf %159, %160 : vector<1x64xf32>
    %cst_36 = arith.constant dense<0.000000e+00> : vector<1x32xf32>
    %162 = tpu.matmul %161, %1, %cst_36 {dimension_numbers = #tpu.dot_dimension_numbers<[1], [0], [0], [1], [0, 0, 1, 1], [], []>} : vector<1x64xf32>, vector<64x32xf32>, vector<1x32xf32> -> vector<1x32xf32>
    %163 = arith.addf %152, %162 : vector<1x32xf32>
    %164 = math.tanh %163 : vector<1x32xf32>
    %165 = vector.extract_strided_slice %159 {offsets = [0, 0], sizes = [1, 32], strides = [1, 1]} : vector<1x64xf32> to vector<1x32xf32>
    %166 = vector.extract_strided_slice %161 {offsets = [0, 0], sizes = [1, 32], strides = [1, 1]} : vector<1x64xf32> to vector<1x32xf32>
    %cst_37 = arith.constant 1.000000e+00 : f32
    %167 = vector.broadcast %cst_37 : f32 to vector<1x32xf32>
    %168 = arith.subf %167, %165 : vector<1x32xf32>
    %169 = arith.mulf %168, %164 : vector<1x32xf32>
    %170 = arith.addf %166, %169 : vector<1x32xf32>
    %c7_i32 = arith.constant 7 : i32
    %171 = arith.index_cast %c7_i32 : i32 to index
    %172 = memref.load %arg1[%171] : memref<8xi32, #tpu.memory_space<smem>>
    %173 = arith.index_cast %172 : i32 to index
    %c0_38 = arith.constant 0 : index
    %174 = vector.load %arg2[%173, %c0_38] : memref<56x128xf32, #tpu.memory_space<vmem>>, vector<1x128xf32>
    %175 = vector.extract_strided_slice %174 {offsets = [0, 0], sizes = [1, 64], strides = [1, 1]} : vector<1x128xf32> to vector<1x64xf32>
    %176 = vector.extract_strided_slice %174 {offsets = [0, 64], sizes = [1, 32], strides = [1, 1]} : vector<1x128xf32> to vector<1x32xf32>
    %cst_39 = arith.constant dense<0.000000e+00> : vector<1x64xf32>
    %177 = tpu.matmul %170, %0, %cst_39 {dimension_numbers = #tpu.dot_dimension_numbers<[1], [0], [0], [1], [0, 0, 1, 1], [], []>} : vector<1x32xf32>, vector<32x64xf32>, vector<1x64xf32> -> vector<1x64xf32>
    %178 = arith.addf %175, %177 : vector<1x64xf32>
    %179 = arith.negf %178 : vector<1x64xf32>
    %180 = math.exp %179 : vector<1x64xf32>
    %cst_40 = arith.constant 1.000000e+00 : f32
    %181 = vector.broadcast %cst_40 : f32 to vector<1x64xf32>
    %182 = arith.addf %181, %180 : vector<1x64xf32>
    %183 = arith.divf %181, %182 : vector<1x64xf32>
    %184 = tpu.concatenate %170, %170 in 1 : vector<1x32xf32>, vector<1x32xf32> -> vector<1x64xf32>
    %185 = arith.mulf %183, %184 : vector<1x64xf32>
    %cst_41 = arith.constant dense<0.000000e+00> : vector<1x32xf32>
    %186 = tpu.matmul %185, %1, %cst_41 {dimension_numbers = #tpu.dot_dimension_numbers<[1], [0], [0], [1], [0, 0, 1, 1], [], []>} : vector<1x64xf32>, vector<64x32xf32>, vector<1x32xf32> -> vector<1x32xf32>
    %187 = arith.addf %176, %186 : vector<1x32xf32>
    %188 = math.tanh %187 : vector<1x32xf32>
    %189 = vector.extract_strided_slice %183 {offsets = [0, 0], sizes = [1, 32], strides = [1, 1]} : vector<1x64xf32> to vector<1x32xf32>
    %190 = vector.extract_strided_slice %185 {offsets = [0, 0], sizes = [1, 32], strides = [1, 1]} : vector<1x64xf32> to vector<1x32xf32>
    %cst_42 = arith.constant 1.000000e+00 : f32
    %191 = vector.broadcast %cst_42 : f32 to vector<1x32xf32>
    %192 = arith.subf %191, %189 : vector<1x32xf32>
    %193 = arith.mulf %192, %188 : vector<1x32xf32>
    %194 = arith.addf %190, %193 : vector<1x32xf32>
    %c8_i32 = arith.constant 8 : i32
    %c0_43 = arith.constant 0 : index
    %c0_44 = arith.constant 0 : index
    %195 = vector.load %arg5[%c0_43, %c0_44] : memref<1x32xf32, #tpu.memory_space<vmem>>, vector<1x32xf32>
    tpu.vector_store %arg5[%c0_43, %c0_44], %194 {strides = array<i32>} : memref<1x32xf32, #tpu.memory_space<vmem>>, vector<1x32xf32>,
    return
  }
  func.func @transform_0(%arg0: i32, %arg1: memref<8xi32, #tpu.memory_space<smem>>) -> (i32, i32) {
    %c0_i32 = arith.constant 0 : i32
    %c0_i32_0 = arith.constant 0 : i32
    %c0_i32_1 = arith.constant 0 : i32
    return %c0_i32, %c0_i32_0 : i32, i32
  }
  func.func @transform_1(%arg0: i32, %arg1: memref<8xi32, #tpu.memory_space<smem>>) -> (i32, i32) {
    %c0_i32 = arith.constant 0 : i32
    %c0_i32_0 = arith.constant 0 : i32
    %c0_i32_1 = arith.constant 0 : i32
    return %c0_i32, %c0_i32_0 : i32, i32
  }
  func.func @transform_2(%arg0: i32, %arg1: memref<8xi32, #tpu.memory_space<smem>>) -> (i32, i32) {
    %c0_i32 = arith.constant 0 : i32
    %c0_i32_0 = arith.constant 0 : i32
    %c0_i32_1 = arith.constant 0 : i32
    return %c0_i32, %c0_i32_0 : i32, i32
  }
  func.func @transform_3(%arg0: i32, %arg1: memref<8xi32, #tpu.memory_space<smem>>) -> (i32, i32) {
    %c0_i32 = arith.constant 0 : i32
    %c0_i32_0 = arith.constant 0 : i32
    %c0_i32_1 = arith.constant 0 : i32
    return %c0_i32, %c0_i32_0 : i32, i32
  }
}

</mosaic_0001>

<bundles_post_ra>
// kernel: rnn_encoder_forward.1
= control target key start
LH: loop header
LB: loop body
LE: loop exit
PB: predicated region body
PF: predicated region fallthrough
CT: control target
= control target key end

     0   :  { %s879_s18 = smov [#allocation3]   ;;  %s1140_s0 = inlined_call_operand.vmem [shape: s32[8], index: 0, kind: input, shape index: {}]   ;;  %s1141_s1 = inlined_call_operand.vmem [shape: f32[56,128], index: 1, kind: input, shape index: {}]   ;;  %s1142_s2 = inlined_call_operand.vmem [shape: f32[32,64], index: 2, kind: input, shape index: {}]   ;;  %s1143_s3 = inlined_call_operand.vmem [shape: f32[64,32], index: 3, kind: input, shape index: {}]   ;;  %s1144_s4 = inlined_call_operand.hbm [shape: f32[1,32], index: 4, kind: output, shape index: {}]  }
   0x1   :  { %s10_s17 = sshll.u32 %s1140_s0, 4  ;;  %s11_s17 = int_to_ptr.vmem [resolvable:$true] %s10_s17 }
   0x2   :  { %13 = dma.vmem_to_smem %s11_s17, 16, %s879_s18, [#allocation2] }
   0x3   :  { %875 = dma.done.wait [#allocation2], 16 }
   0x4   :  { %876 = vsyncadd [#allocation2], 4294967280 }
   0x5   :  { %16 = sfence }
   0x6   :  { %v915_v0 = vld [vmem:[%s1142_s2 + $0x18] sm:$0xff]  ;;  %v920_v1 = vld [vmem:[%s1142_s2 + $0x10] sm:$0xff] }
   0x7   :  { %55 = vmatpush.msra.mxu0 %v915_v0  ;;  %139 = vmatpush.msra.mxu2 %v915_v0 }
   0x8   :  { %17 = vsyncpa [#allocation5], 0  ;;  %v927_v2 = vld [vmem:[%s1142_s2 + $0x8] sm:$0xff]  ;;  %v934_v3 = vld [vmem:[%s1142_s2] sm:$0xff]  ;;  %v880_v4 = vmov 0.0   ;;  %s36_s27 = sld [smem:[#allocation3]] }
   0x9   :  { %56 = vmatpush.msra.mxu0 %v920_v1  ;;  %140 = vmatpush.msra.mxu2 %v920_v1  ;;  %v951_v5 = vld [vmem:[%s1143_s3 + $0x38] sm:$0xff]  ;;  %v958_v6 = vld [vmem:[%s1143_s3 + $0x30] sm:$0xff]  ;;  %v966_v7 = vld [vmem:[%s1143_s3 + $0x28] sm:$0xff]  ;;  %vm84_vm4 = vcmask 523264   ;;  %vm39_vm5 = vcmask 261120   ;;  %s882_s19 = smov 32  }
   0xa   :  { %96 = vmatpush.msra.mxu1 %v951_v5  ;;  %183 = vmatpush.msra.mxu3 %v951_v5  ;;  %v971_v8 = vld [vmem:[%s1143_s3 + $0x20] sm:$0xff]  ;;  %v979_v9 = vld [vmem:[%s1143_s3 + $0x18] sm:$0xff]  ;;  %v987_v10 = vld [vmem:[%s1143_s3 + $0x10] sm:$0xff]  ;;  %s758_s20 = sld [smem:[#allocation3 + $0x1]] }
   0xb   :  { %57 = vmatpush.msra.mxu0 %v927_v2  ;;  %141 = vmatpush.msra.mxu2 %v927_v2  ;;  %v998_v11 = vld [vmem:[%s1143_s3 + $0x8] sm:$0xff]  ;;  %v1006_v12 = vld [vmem:[%s1143_s3] sm:$0xff]  ;;  %s881_s3 = smov 64   ;;  %s762_s23 = sld [smem:[#allocation3 + $0x2]] }
   0xc   :  { %97 = vmatpush.msra.mxu1 %v958_v6  ;;  %184 = vmatpush.msra.mxu3 %v958_v6  ;;  %s766_s26 = sld [smem:[#allocation3 + $0x3]] }
   0xd   :  { %58 = vmatpush.msra.mxu0 %v934_v3  ;;  %142 = vmatpush.msra.mxu2 %v934_v3  ;;  %s770_s30 = sld [smem:[#allocation3 + $0x4]] }
   0xe   :  { %59 = vmatmul.f32.vlgmr.msra.gmra.mxu0 %v880_v4  ;;  %98 = vmatpush.msra.mxu1 %v966_v7  ;;  %s37_s14 = scalar_lea.vmem %s1141_s1, %s36_s27  ;;  %s774_s8 = sld [smem:[#allocation3 + $0x5]] }
   0xf   :  { %226 = vmatpush.msrb.mxu0 %v915_v0  ;;  %270 = vmatpush.msrb.mxu2 %v951_v5  ;;  %v38_v13 = vld [vmem:[%s37_s14] sm:$0x1]  ;;  %s778_s12 = sld [smem:[#allocation3 + $0x6]] }
  0x10   :  { %185 = vmatpush.msra.mxu3 %v966_v7  ;;  %99 = vmatpush.msra.mxu1 %v971_v8  ;;  %s122_s0 = scalar_lea.vmem %s1141_s1, %s758_s20  ;;  %s782_s16 = sld [smem:[#allocation3 + $0x7]] }
  0x11   :  { %227 = vmatpush.msrb.mxu0 %v920_v1  ;;  %271 = vmatpush.msrb.mxu2 %v958_v6  ;;  %v123_v38 = vld [vmem:[%s122_s0] sm:$0x1]  ;;  %s209_s2 = scalar_lea.vmem %s1141_s1, %s762_s23  ;;  %s739_s0 = sshll.u32 %s1144_s4, 4  ;;  %s740_s0 = int_to_ptr.hbm [resolvable:$true] %s739_s0 }
  0x12   :  { %186 = vmatpush.msra.mxu3 %v971_v8  ;;  %100 = vmatpush.msra.mxu1 %v979_v9  ;;  %s296_s29 = scalar_lea.vmem %s1141_s1, %s766_s26 }
  0x13   :  { %228 = vmatpush.msrb.mxu0 %v927_v2  ;;  %272 = vmatpush.msrb.mxu2 %v966_v7  ;;  %s383_s7 = scalar_lea.vmem %s1141_s1, %s770_s30 }
  0x14   :  { %187 = vmatpush.msra.mxu3 %v979_v9  ;;  %101 = vmatpush.msra.mxu1 %v987_v10  ;;  %s470_s11 = scalar_lea.vmem %s1141_s1, %s774_s8 }
  0x15   :  { %229 = vmatpush.msrb.mxu0 %v934_v3  ;;  %273 = vmatpush.msrb.mxu2 %v971_v8  ;;  %s557_s15 = scalar_lea.vmem %s1141_s1, %s778_s12 }
  0x16   :  { %188 = vmatpush.msra.mxu3 %v987_v10  ;;  %102 = vmatpush.msra.mxu1 %v998_v11  ;;  %s644_s20 = scalar_lea.vmem %s1141_s1, %s782_s16  ;;  %s883_s1 = smov [#allocation4]  }
  0x17   :  { %313 = vmatpush.msra.mxu0 %v915_v0  ;;  %274 = vmatpush.msrb.mxu2 %v979_v9 }
  0x18   :  { %189 = vmatpush.msra.mxu3 %v998_v11  ;;  %103 = vmatpush.msra.mxu1 %v1006_v12 }
  0x19   :  { %314 = vmatpush.msra.mxu0 %v920_v1  ;;  %275 = vmatpush.msrb.mxu2 %v987_v10 }
  0x1a   :  { %190 = vmatpush.msra.mxu3 %v1006_v12  ;;  %357 = vmatpush.msrb.mxu1 %v951_v5 }
  0x1b   :  { %315 = vmatpush.msra.mxu0 %v927_v2  ;;  %276 = vmatpush.msrb.mxu2 %v998_v11 }
  0x1c   :  { %400 = vmatpush.msrb.mxu3 %v915_v0  ;;  %358 = vmatpush.msrb.mxu1 %v958_v6 }
  0x1d   :  { %316 = vmatpush.msra.mxu0 %v934_v3  ;;  %277 = vmatpush.msrb.mxu2 %v1006_v12 }
  0x1e   :  { %401 = vmatpush.msrb.mxu3 %v920_v1  ;;  %359 = vmatpush.msrb.mxu1 %v966_v7 }
  0x20   :  { %402 = vmatpush.msrb.mxu3 %v927_v2  ;;  %360 = vmatpush.msrb.mxu1 %v971_v8 }
  0x22   :  { %403 = vmatpush.msrb.mxu3 %v934_v3  ;;  %361 = vmatpush.msrb.mxu1 %v979_v9 }
  0x24   :  { %362 = vmatpush.msrb.mxu1 %v987_v10 }
  0x26   :  { %363 = vmatpush.msrb.mxu1 %v998_v11 }
  0x28   :  { %364 = vmatpush.msrb.mxu1 %v1006_v12 }
  0x8b   :  { %v60_v14 = vpop.f32.mrf.mxu0 }
  0x8c   :  { %v63_v15 = vadd.f32 %v60_v14, %v38_v13 }
  0x8e   :  { %v756_v16 = vmul.f32 -1.442695, %v63_v15 }
  0x90   :  { %791 = vpow2.f32 %v756_v16 }
  0x96   :  { %v792_v17 = vpop.eup %791 }
  0x97   :  { %v67_v18 = vadd.f32 1.0, %v792_v17 }
  0x99   :  { %793 = vrcp.f32 %v67_v18  ;;  %v79_v22 = vand.u32 2147483648, %v67_v18  ;;  %v77_v24 = vand.u32 2147483647, %v67_v18  ;;  %vm73_vm1 = vweird.f32 %v67_v18 }
  0x9b   :  { %v80_v26 = vor.u32 1.1754944e-38, %v79_v22  ;;  %vm78_vm3 = vcmp.eq.f32.partialorder %v77_v24, 8.507059e+37 }
  0x9f   :  { %v794_v19 = vpop.eup %793 }
  0xa0   :  { %v69_v20 = vmul.f32 %v794_v19, %v67_v18  ;;  %vm74_vm0 = vweird.f32 %v794_v19 }
  0xa1   :  { %vm75_vm2 = vmor %vm73_vm1, %vm74_vm0 }
  0xa2   :  { %v70_v21 = vsub.f32 1.0, %v69_v20 }
  0xa4   :  { %v71_v23 = vmul.f32 %v794_v19, %v70_v21 }
  0xa6   :  { %v72_v25 = vadd.f32 %v794_v19, %v71_v23 }
  0xa8   :  { %v76_v27 = vsel %vm75_vm2, %v794_v19, %v72_v25 }
  0xa9   :  { %v81_v28 = vsel %vm78_vm3, %v80_v26, %v76_v27 }
  0xaa   :  { %v83_v29 = vmul.f32 0.0, %v81_v28  ;;  %v114_v34 = vsub.f32 1.0, %v81_v28 }
  0xac   :  { %757 = vmatmul.msk.f32.vlgmr.msra.gmra.mxu1 %vm84_vm4, %v83_v29 }
  0xad   :  { %705 = vmatpush.msra.mxu1 %v951_v5 }
  0xaf   :  { %706 = vmatpush.msra.mxu1 %v958_v6 }
  0xb1   :  { %707 = vmatpush.msra.mxu1 %v966_v7 }
  0xb3   :  { %708 = vmatpush.msra.mxu1 %v971_v8 }
  0xb5   :  { %709 = vmatpush.msra.mxu1 %v979_v9 }
  0xb7   :  { %710 = vmatpush.msra.mxu1 %v987_v10 }
  0xb9   :  { %711 = vmatpush.msra.mxu1 %v998_v11 }
  0xbb   :  { %712 = vmatpush.msra.mxu1 %v1006_v12 }
 0x129   :  { %v105_v30 = vpop.f32.mrf.mxu1 }
 0x12a   :  { %109 = vrot.lane.b32.xlu0 %v105_v30, %s881_s3 }
 0x19c   :  { %v110_v31 = vpop.permute.xlu0 %109 }
 0x19d   :  { %v112_v32 = vadd.f32 %v110_v31, %v38_v13  ;;  %v210_v13 = vld [vmem:[%s209_s2] sm:$0x1] }
 0x19f   :  { %795 = vtanh.f32 %v112_v32 }
 0x1a5   :  { %v796_v33 = vpop.eup %795 }
 0x1a6   :  { %116 = vrot.lane.b32.xlu0 %v796_v33, %s881_s3 }
 0x218   :  { %v117_v35 = vpop.permute.xlu0 %116 }
 0x219   :  { %v119_v36 = vmul.f32 %v117_v35, %v114_v34 }
 0x21b   :  { %v120_v37 = vadd.f32 %v119_v36, %v83_v29 }
 0x21d   :  { %167 = vrot.lane.b32.xlu1 %v120_v37, %s882_s19  ;;  %759 = vmatmul.msk.f32.vlgmr.msra.gmra.mxu2 %vm39_vm5, %v120_v37 }
 0x21e   :  { %487 = vmatpush.msra.mxu2 %v915_v0 }
 0x220   :  { %488 = vmatpush.msra.mxu2 %v920_v1 }
 0x222   :  { %489 = vmatpush.msra.mxu2 %v927_v2 }
 0x224   :  { %490 = vmatpush.msra.mxu2 %v934_v3 }
 0x28f   :  { %v168_v50 = vpop.permute.xlu1 %167 }
 0x290   :  { %v170_v54 = vsel %vm39_vm5, %v120_v37, %v168_v50 }
 0x2a0   :  { %v144_v39 = vpop.f32.mrf.mxu2 }
 0x2a1   :  { %v147_v40 = vadd.f32 %v144_v39, %v123_v38 }
 0x2a3   :  { %v760_v41 = vmul.f32 -1.442695, %v147_v40 }
 0x2a5   :  { %797 = vpow2.f32 %v760_v41 }
 0x2ab   :  { %v798_v42 = vpop.eup %797 }
 0x2ac   :  { %v151_v43 = vadd.f32 1.0, %v798_v42 }
 0x2ae   :  { %799 = vrcp.f32 %v151_v43  ;;  %v163_v47 = vand.u32 2147483648, %v151_v43  ;;  %v161_v49 = vand.u32 2147483647, %v151_v43  ;;  %vm157_vm7 = vweird.f32 %v151_v43 }
 0x2b0   :  { %v164_v52 = vor.u32 1.1754944e-38, %v163_v47  ;;  %vm162_vm9 = vcmp.eq.f32.partialorder %v161_v49, 8.507059e+37 }
 0x2b4   :  { %v800_v44 = vpop.eup %799 }
 0x2b5   :  { %v153_v45 = vmul.f32 %v800_v44, %v151_v43  ;;  %vm158_vm6 = vweird.f32 %v800_v44 }
 0x2b6   :  { %vm159_vm8 = vmor %vm157_vm7, %vm158_vm6 }
 0x2b7   :  { %v154_v46 = vsub.f32 1.0, %v153_v45 }
 0x2b9   :  { %v155_v48 = vmul.f32 %v800_v44, %v154_v46 }
 0x2bb   :  { %v156_v51 = vadd.f32 %v800_v44, %v155_v48 }
 0x2bd   :  { %v160_v53 = vsel %vm159_vm8, %v800_v44, %v156_v51 }
 0x2be   :  { %v165_v55 = vsel %vm162_vm9, %v164_v52, %v160_v53 }
 0x2bf   :  { %v171_v56 = vmul.f32 %v170_v54, %v165_v55  ;;  %v201_v61 = vsub.f32 1.0, %v165_v55 }
 0x2c1   :  { %761 = vmatmul.msk.f32.vlgmr.msra.gmra.mxu3 %vm84_vm4, %v171_v56 }
 0x2c2   :  { %531 = vmatpush.msra.mxu3 %v951_v5 }
 0x2c4   :  { %532 = vmatpush.msra.mxu3 %v958_v6 }
 0x2c6   :  { %533 = vmatpush.msra.mxu3 %v966_v7 }
 0x2c8   :  { %534 = vmatpush.msra.mxu3 %v971_v8 }
 0x2ca   :  { %535 = vmatpush.msra.mxu3 %v979_v9 }
 0x2cc   :  { %536 = vmatpush.msra.mxu3 %v987_v10 }
 0x2ce   :  { %537 = vmatpush.msra.mxu3 %v998_v11 }
 0x2d0   :  { %538 = vmatpush.msra.mxu3 %v1006_v12 }
 0x344   :  { %v192_v57 = vpop.f32.mrf.mxu3 }
 0x345   :  { %196 = vrot.lane.b32.xlu1 %v192_v57, %s881_s3 }
 0x3b7   :  { %v197_v58 = vpop.permute.xlu1 %196 }
 0x3b8   :  { %v199_v59 = vadd.f32 %v197_v58, %v123_v38 }
 0x3ba   :  { %801 = vtanh.f32 %v199_v59  ;;  %v384_v59 = vld [vmem:[%s383_s7] sm:$0x1] }
 0x3c0   :  { %v802_v60 = vpop.eup %801 }
 0x3c1   :  { %203 = vrot.lane.b32.xlu2 %v802_v60, %s881_s3 }
 0x41b   :  { %v204_v62 = vpop.permute.xlu2 %203 }
 0x41c   :  { %v206_v63 = vmul.f32 %v204_v62, %v201_v61 }
 0x41e   :  { %v207_v4 = vadd.f32 %v206_v63, %v171_v56 }
 0x420   :  { %254 = vrot.lane.b32.xlu2 %v207_v4, %s882_s19  ;;  %763 = vmatmul.msk.f32.vlgmr.msrb.gmra.mxu0 %vm39_vm5, %v207_v4 }
 0x421   :  { %444 = vmatpush.msrb.mxu0 %v951_v5 }
 0x423   :  { %445 = vmatpush.msrb.mxu0 %v958_v6 }
 0x425   :  { %446 = vmatpush.msrb.mxu0 %v966_v7 }
 0x427   :  { %447 = vmatpush.msrb.mxu0 %v971_v8 }
 0x429   :  { %448 = vmatpush.msrb.mxu0 %v979_v9 }
 0x42b   :  { %449 = vmatpush.msrb.mxu0 %v987_v10 }
 0x42d   :  { %450 = vmatpush.msrb.mxu0 %v998_v11 }
 0x42f   :  { %451 = vmatpush.msrb.mxu0 %v1006_v12 }
 0x47a   :  { %v255_v25 = vpop.permute.xlu2 %254 }
 0x47b   :  { %v257_v29 = vsel %vm39_vm5, %v207_v4, %v255_v25 }
 0x49d   :  { %v231_v14 = vpop.f32.mrf.mxu0 }
 0x49e   :  { %v234_v15 = vadd.f32 %v231_v14, %v210_v13 }
 0x4a0   :  { %v764_v16 = vmul.f32 -1.442695, %v234_v15 }
 0x4a2   :  { %803 = vpow2.f32 %v764_v16 }
 0x4a8   :  { %v804_v17 = vpop.eup %803 }
 0x4a9   :  { %v238_v18 = vadd.f32 1.0, %v804_v17 }
 0x4ab   :  { %805 = vrcp.f32 %v238_v18  ;;  %v250_v22 = vand.u32 2147483648, %v238_v18  ;;  %v248_v24 = vand.u32 2147483647, %v238_v18  ;;  %vm244_vm11 = vweird.f32 %v238_v18 }
 0x4ad   :  { %v251_v27 = vor.u32 1.1754944e-38, %v250_v22  ;;  %vm249_vm13 = vcmp.eq.f32.partialorder %v248_v24, 8.507059e+37 }
 0x4b1   :  { %v806_v19 = vpop.eup %805 }
 0x4b2   :  { %v240_v20 = vmul.f32 %v806_v19, %v238_v18  ;;  %vm245_vm10 = vweird.f32 %v806_v19 }
 0x4b3   :  { %vm246_vm12 = vmor %vm244_vm11, %vm245_vm10 }
 0x4b4   :  { %v241_v21 = vsub.f32 1.0, %v240_v20 }
 0x4b6   :  { %v242_v23 = vmul.f32 %v806_v19, %v241_v21 }
 0x4b8   :  { %v243_v26 = vadd.f32 %v806_v19, %v242_v23 }
 0x4ba   :  { %v247_v28 = vsel %vm246_vm12, %v806_v19, %v243_v26 }
 0x4bb   :  { %v252_v30 = vsel %vm249_vm13, %v251_v27, %v247_v28 }
 0x4bc   :  { %v258_v31 = vmul.f32 %v257_v29, %v252_v30 }
 0x4be   :  { %765 = vmatmul.msk.f32.vlgmr.msrb.gmra.mxu2 %vm84_vm4, %v258_v31 }
 0x4bf   :  { %618 = vmatpush.msrb.mxu2 %v951_v5 }
 0x4c1   :  { %619 = vmatpush.msrb.mxu2 %v958_v6  ;;  %v288_v6 = vsub.f32 1.0, %v252_v30  ;;  %v471_v30 = vld [vmem:[%s470_s11] sm:$0x1] }
 0x4c3   :  { %620 = vmatpush.msrb.mxu2 %v966_v7 }
 0x4c5   :  { %621 = vmatpush.msrb.mxu2 %v971_v8 }
 0x4c7   :  { %622 = vmatpush.msrb.mxu2 %v979_v9  ;;  %v297_v9 = vld [vmem:[%s296_s29] sm:$0x1] }
 0x4c9   :  { %623 = vmatpush.msrb.mxu2 %v987_v10 }
 0x4cb   :  { %624 = vmatpush.msrb.mxu2 %v998_v11 }
 0x4cd   :  { %625 = vmatpush.msrb.mxu2 %v1006_v12 }
 0x541   :  { %v279_v32 = vpop.f32.mrf.mxu2 }
 0x542   :  { %283 = vrot.lane.b32.xlu0 %v279_v32, %s881_s3 }
 0x5b4   :  { %v284_v33 = vpop.permute.xlu0 %283 }
 0x5b5   :  { %v286_v34 = vadd.f32 %v284_v33, %v210_v13 }
 0x5b7   :  { %807 = vtanh.f32 %v286_v34 }
 0x5bd   :  { %v808_v5 = vpop.eup %807 }
 0x5be   :  { %290 = vrot.lane.b32.xlu1 %v808_v5, %s881_s3 }
 0x630   :  { %v291_v7 = vpop.permute.xlu1 %290 }
 0x631   :  { %v293_v8 = vmul.f32 %v291_v7, %v288_v6 }
 0x633   :  { %v294_v35 = vadd.f32 %v293_v8, %v258_v31 }
 0x635   :  { %341 = vrot.lane.b32.xlu2 %v294_v35, %s882_s19  ;;  %767 = vmatmul.msk.f32.vlgmr.msra.gmra.mxu0 %vm39_vm5, %v294_v35 }
 0x636   :  { %661 = vmatpush.msra.mxu0 %v915_v0 }
 0x638   :  { %662 = vmatpush.msra.mxu0 %v920_v1 }
 0x63a   :  { %663 = vmatpush.msra.mxu0 %v927_v2 }
 0x63c   :  { %664 = vmatpush.msra.mxu0 %v934_v3 }
 0x68f   :  { %v342_v44 = vpop.permute.xlu2 %341 }
 0x690   :  { %v344_v48 = vsel %vm39_vm5, %v294_v35, %v342_v44 }
 0x6b2   :  { %v318_v10 = vpop.f32.mrf.mxu0 }
 0x6b3   :  { %v321_v11 = vadd.f32 %v318_v10, %v297_v9 }
 0x6b5   :  { %v768_v12 = vmul.f32 -1.442695, %v321_v11 }
 0x6b7   :  { %809 = vpow2.f32 %v768_v12 }
 0x6bd   :  { %v810_v36 = vpop.eup %809 }
 0x6be   :  { %v325_v37 = vadd.f32 1.0, %v810_v36 }
 0x6c0   :  { %811 = vrcp.f32 %v325_v37  ;;  %v337_v41 = vand.u32 2147483648, %v325_v37  ;;  %v335_v43 = vand.u32 2147483647, %v325_v37  ;;  %vm331_vm15 = vweird.f32 %v325_v37 }
 0x6c2   :  { %v338_v46 = vor.u32 1.1754944e-38, %v337_v41  ;;  %vm336_vm1 = vcmp.eq.f32.partialorder %v335_v43, 8.507059e+37 }
 0x6c6   :  { %v812_v38 = vpop.eup %811 }
 0x6c7   :  { %v327_v39 = vmul.f32 %v812_v38, %v325_v37  ;;  %vm332_vm14 = vweird.f32 %v812_v38 }
 0x6c8   :  { %vm333_vm0 = vmor %vm331_vm15, %vm332_vm14 }
 0x6c9   :  { %v328_v40 = vsub.f32 1.0, %v327_v39 }
 0x6cb   :  { %v329_v42 = vmul.f32 %v812_v38, %v328_v40 }
 0x6cd   :  { %v330_v45 = vadd.f32 %v812_v38, %v329_v42 }
 0x6cf   :  { %v334_v47 = vsel %vm333_vm0, %v812_v38, %v330_v45 }
 0x6d0   :  { %v339_v49 = vsel %vm336_vm1, %v338_v46, %v334_v47 }
 0x6d1   :  { %v345_v50 = vmul.f32 %v344_v48, %v339_v49  ;;  %v375_v55 = vsub.f32 1.0, %v339_v49  ;;  %v558_v49 = vld [vmem:[%s557_s15] sm:$0x1] }
 0x6d3   :  { %769 = vmatmul.msk.f32.vlgmr.msrb.gmra.mxu1 %vm84_vm4, %v345_v50 }
 0x750   :  { %v366_v51 = vpop.f32.mrf.mxu1 }
 0x751   :  { %370 = vrot.lane.b32.xlu0 %v366_v51, %s881_s3 }
 0x7c3   :  { %v371_v52 = vpop.permute.xlu0 %370 }
 0x7c4   :  { %v373_v53 = vadd.f32 %v371_v52, %v297_v9 }
 0x7c6   :  { %813 = vtanh.f32 %v373_v53 }
 0x7cc   :  { %v814_v54 = vpop.eup %813 }
 0x7cd   :  { %377 = vrot.lane.b32.xlu1 %v814_v54, %s881_s3 }
 0x83f   :  { %v378_v56 = vpop.permute.xlu1 %377 }
 0x840   :  { %v380_v57 = vmul.f32 %v378_v56, %v375_v55 }
 0x842   :  { %v381_v58 = vadd.f32 %v380_v57, %v345_v50 }
 0x844   :  { %428 = vrot.lane.b32.xlu2 %v381_v58, %s882_s19  ;;  %771 = vmatmul.msk.f32.vlgmr.msrb.gmra.mxu3 %vm39_vm5, %v381_v58 }
 0x845   :  { %574 = vmatpush.msrb.mxu3 %v915_v0 }
 0x847   :  { %575 = vmatpush.msrb.mxu3 %v920_v1 }
 0x849   :  { %576 = vmatpush.msrb.mxu3 %v927_v2 }
 0x84b   :  { %577 = vmatpush.msrb.mxu3 %v934_v3 }
 0x89e   :  { %v429_v15 = vpop.permute.xlu2 %428 }
 0x89f   :  { %v431_v19 = vsel %vm39_vm5, %v381_v58, %v429_v15 }
 0x8c7   :  { %v405_v60 = vpop.f32.mrf.mxu3 }
 0x8c8   :  { %v408_v61 = vadd.f32 %v405_v60, %v384_v59 }
 0x8ca   :  { %v772_v62 = vmul.f32 -1.442695, %v408_v61 }
 0x8cc   :  { %815 = vpow2.f32 %v772_v62 }
 0x8d2   :  { %v816_v63 = vpop.eup %815 }
 0x8d3   :  { %v412_v4 = vadd.f32 1.0, %v816_v63 }
 0x8d5   :  { %817 = vrcp.f32 %v412_v4  ;;  %v424_v14 = vand.u32 2147483648, %v412_v4  ;;  %v422_v3 = vand.u32 2147483647, %v412_v4  ;;  %vm418_vm3 = vweird.f32 %v412_v4 }
 0x8d7   :  { %v425_v17 = vor.u32 1.1754944e-38, %v424_v14  ;;  %vm423_vm7 = vcmp.eq.f32.partialorder %v422_v3, 8.507059e+37 }
 0x8db   :  { %v818_v0 = vpop.eup %817 }
 0x8dc   :  { %v414_v13 = vmul.f32 %v818_v0, %v412_v4  ;;  %vm419_vm2 = vweird.f32 %v818_v0 }
 0x8dd   :  { %vm420_vm6 = vmor %vm418_vm3, %vm419_vm2 }
 0x8de   :  { %v415_v1 = vsub.f32 1.0, %v414_v13 }
 0x8e0   :  { %v416_v2 = vmul.f32 %v818_v0, %v415_v1 }
 0x8e2   :  { %v417_v16 = vadd.f32 %v818_v0, %v416_v2 }
 0x8e4   :  { %v421_v18 = vsel %vm420_vm6, %v818_v0, %v417_v16 }
 0x8e5   :  { %v426_v20 = vsel %vm423_vm7, %v425_v17, %v421_v18 }
 0x8e6   :  { %v432_v21 = vmul.f32 %v431_v19, %v426_v20  ;;  %v462_v26 = vsub.f32 1.0, %v426_v20  ;;  %v645_v20 = vld [vmem:[%s644_s20] sm:$0x1] }
 0x8e8   :  { %773 = vmatmul.msk.f32.vlgmr.msrb.gmra.mxu0 %vm84_vm4, %v432_v21 }
 0x965   :  { %v453_v22 = vpop.f32.mrf.mxu0 }
 0x966   :  { %457 = vrot.lane.b32.xlu0 %v453_v22, %s881_s3 }
 0x9d8   :  { %v458_v23 = vpop.permute.xlu0 %457 }
 0x9d9   :  { %v460_v24 = vadd.f32 %v458_v23, %v384_v59 }
 0x9db   :  { %819 = vtanh.f32 %v460_v24 }
 0x9e1   :  { %v820_v25 = vpop.eup %819 }
 0x9e2   :  { %464 = vrot.lane.b32.xlu1 %v820_v25, %s881_s3 }
 0xa54   :  { %v465_v27 = vpop.permute.xlu1 %464 }
 0xa55   :  { %v467_v28 = vmul.f32 %v465_v27, %v462_v26 }
 0xa57   :  { %v468_v29 = vadd.f32 %v467_v28, %v432_v21 }
 0xa59   :  { %515 = vrot.lane.b32.xlu2 %v468_v29, %s882_s19  ;;  %775 = vmatmul.msk.f32.vlgmr.msra.gmra.mxu2 %vm39_vm5, %v468_v29 }
 0xab3   :  { %v516_v11 = vpop.permute.xlu2 %515 }
 0xab4   :  { %v518_v38 = vsel %vm39_vm5, %v468_v29, %v516_v11 }
 0xadc   :  { %v492_v31 = vpop.f32.mrf.mxu2 }
 0xadd   :  { %v495_v32 = vadd.f32 %v492_v31, %v471_v30 }
 0xadf   :  { %v776_v33 = vmul.f32 -1.442695, %v495_v32 }
 0xae1   :  { %821 = vpow2.f32 %v776_v33 }
 0xae7   :  { %v822_v34 = vpop.eup %821 }
 0xae8   :  { %v499_v5 = vadd.f32 1.0, %v822_v34 }
 0xaea   :  { %823 = vrcp.f32 %v499_v5  ;;  %v511_v35 = vand.u32 2147483648, %v499_v5  ;;  %v509_v10 = vand.u32 2147483647, %v499_v5  ;;  %vm505_vm9 = vweird.f32 %v499_v5 }
 0xaec   :  { %v512_v36 = vor.u32 1.1754944e-38, %v511_v35  ;;  %vm510_vm11 = vcmp.eq.f32.partialorder %v509_v10, 8.507059e+37 }
 0xaf0   :  { %v824_v6 = vpop.eup %823 }
 0xaf1   :  { %v501_v7 = vmul.f32 %v824_v6, %v499_v5  ;;  %vm506_vm8 = vweird.f32 %v824_v6 }
 0xaf2   :  { %vm507_vm10 = vmor %vm505_vm9, %vm506_vm8 }
 0xaf3   :  { %v502_v8 = vsub.f32 1.0, %v501_v7 }
 0xaf5   :  { %v503_v9 = vmul.f32 %v824_v6, %v502_v8 }
 0xaf7   :  { %v504_v12 = vadd.f32 %v824_v6, %v503_v9 }
 0xaf9   :  { %v508_v37 = vsel %vm507_vm10, %v824_v6, %v504_v12 }
 0xafa   :  { %v513_v39 = vsel %vm510_vm11, %v512_v36, %v508_v37 }
 0xafb   :  { %v519_v40 = vmul.f32 %v518_v38, %v513_v39  ;;  %v549_v45 = vsub.f32 1.0, %v513_v39 }
 0xafd   :  { %777 = vmatmul.msk.f32.vlgmr.msra.gmra.mxu3 %vm84_vm4, %v519_v40 }
 0xb80   :  { %v540_v41 = vpop.f32.mrf.mxu3 }
 0xb81   :  { %544 = vrot.lane.b32.xlu0 %v540_v41, %s881_s3 }
 0xbf3   :  { %v545_v42 = vpop.permute.xlu0 %544 }
 0xbf4   :  { %v547_v43 = vadd.f32 %v545_v42, %v471_v30 }
 0xbf6   :  { %825 = vtanh.f32 %v547_v43 }
 0xbfc   :  { %v826_v44 = vpop.eup %825 }
 0xbfd   :  { %551 = vrot.lane.b32.xlu1 %v826_v44, %s881_s3 }
 0xc6f   :  { %v552_v46 = vpop.permute.xlu1 %551 }
 0xc70   :  { %v554_v47 = vmul.f32 %v552_v46, %v549_v45 }
 0xc72   :  { %v555_v48 = vadd.f32 %v554_v47, %v519_v40 }
 0xc74   :  { %602 = vrot.lane.b32.xlu2 %v555_v48, %s882_s19  ;;  %779 = vmatmul.msk.f32.vlgmr.msrb.gmra.mxu3 %vm39_vm5, %v555_v48 }
 0xcce   :  { %v603_v61 = vpop.permute.xlu2 %602 }
 0xccf   :  { %v605_v0 = vsel %vm39_vm5, %v555_v48, %v603_v61 }
 0xcf7   :  { %v579_v50 = vpop.f32.mrf.mxu3 }
 0xcf8   :  { %v582_v51 = vadd.f32 %v579_v50, %v558_v49 }
 0xcfa   :  { %v780_v52 = vmul.f32 -1.442695, %v582_v51 }
 0xcfc   :  { %827 = vpow2.f32 %v780_v52 }
 0xd02   :  { %v828_v53 = vpop.eup %827 }
 0xd03   :  { %v586_v54 = vadd.f32 1.0, %v828_v53 }
 0xd05   :  { %829 = vrcp.f32 %v586_v54  ;;  %v598_v58 = vand.u32 2147483648, %v586_v54  ;;  %v596_v60 = vand.u32 2147483647, %v586_v54  ;;  %vm592_vm13 = vweird.f32 %v586_v54 }
 0xd07   :  { %v599_v63 = vor.u32 1.1754944e-38, %v598_v58  ;;  %vm597_vm15 = vcmp.eq.f32.partialorder %v596_v60, 8.507059e+37 }
 0xd0b   :  { %v830_v55 = vpop.eup %829 }
 0xd0c   :  { %v588_v56 = vmul.f32 %v830_v55, %v586_v54  ;;  %vm593_vm12 = vweird.f32 %v830_v55 }
 0xd0d   :  { %vm594_vm14 = vmor %vm592_vm13, %vm593_vm12 }
 0xd0e   :  { %v589_v57 = vsub.f32 1.0, %v588_v56 }
 0xd10   :  { %v590_v59 = vmul.f32 %v830_v55, %v589_v57 }
 0xd12   :  { %v591_v62 = vadd.f32 %v830_v55, %v590_v59 }
 0xd14   :  { %v595_v4 = vsel %vm594_vm14, %v830_v55, %v591_v62 }
 0xd15   :  { %v600_v13 = vsel %vm597_vm15, %v599_v63, %v595_v4 }
 0xd16   :  { %v606_v1 = vmul.f32 %v605_v0, %v600_v13  ;;  %v636_v16 = vsub.f32 1.0, %v600_v13 }
 0xd18   :  { %781 = vmatmul.msk.f32.vlgmr.msrb.gmra.mxu2 %vm84_vm4, %v606_v1 }
 0xd9b   :  { %v627_v14 = vpop.f32.mrf.mxu2 }
 0xd9c   :  { %631 = vrot.lane.b32.xlu0 %v627_v14, %s881_s3 }
 0xe0e   :  { %v632_v2 = vpop.permute.xlu0 %631 }
 0xe0f   :  { %v634_v3 = vadd.f32 %v632_v2, %v558_v49 }
 0xe11   :  { %831 = vtanh.f32 %v634_v3 }
 0xe17   :  { %v832_v15 = vpop.eup %831 }
 0xe18   :  { %638 = vrot.lane.b32.xlu1 %v832_v15, %s881_s3 }
 0xe8a   :  { %v639_v17 = vpop.permute.xlu1 %638 }
 0xe8b   :  { %v641_v18 = vmul.f32 %v639_v17, %v636_v16 }
 0xe8d   :  { %v642_v19 = vadd.f32 %v641_v18, %v606_v1 }
 0xe8f   :  { %689 = vrot.lane.b32.xlu2 %v642_v19, %s882_s19  ;;  %783 = vmatmul.msk.f32.vlgmr.msra.gmra.mxu0 %vm39_vm5, %v642_v19  ;;  %s737_s19 = sshll.u32 %s883_s1, 4  ;;  %s738_s19 = int_to_ptr.vmem [resolvable:$true] %s737_s19 }
 0xee9   :  { %v690_v32 = vpop.permute.xlu2 %689 }
 0xeea   :  { %v692_v6 = vsel %vm39_vm5, %v642_v19, %v690_v32  ;;  %vm730_vm5 = vcmask 253952  }
 0xf0c   :  { %v666_v21 = vpop.f32.mrf.mxu0 }
 0xf0d   :  { %v669_v22 = vadd.f32 %v666_v21, %v645_v20 }
 0xf0f   :  { %v784_v23 = vmul.f32 -1.442695, %v669_v22 }
 0xf11   :  { %833 = vpow2.f32 %v784_v23 }
 0xf17   :  { %v834_v24 = vpop.eup %833 }
 0xf18   :  { %v673_v25 = vadd.f32 1.0, %v834_v24 }
 0xf1a   :  { %835 = vrcp.f32 %v673_v25  ;;  %v685_v29 = vand.u32 2147483648, %v673_v25  ;;  %v683_v31 = vand.u32 2147483647, %v673_v25  ;;  %vm679_vm1 = vweird.f32 %v673_v25 }
 0xf1c   :  { %v686_v34 = vor.u32 1.1754944e-38, %v685_v29  ;;  %vm684_vm3 = vcmp.eq.f32.partialorder %v683_v31, 8.507059e+37 }
 0xf20   :  { %v836_v26 = vpop.eup %835 }
 0xf21   :  { %v675_v27 = vmul.f32 %v836_v26, %v673_v25  ;;  %vm680_vm0 = vweird.f32 %v836_v26 }
 0xf22   :  { %vm681_vm2 = vmor %vm679_vm1, %vm680_vm0 }
 0xf23   :  { %v676_v28 = vsub.f32 1.0, %v675_v27 }
 0xf25   :  { %v677_v30 = vmul.f32 %v836_v26, %v676_v28 }
 0xf27   :  { %v678_v33 = vadd.f32 %v836_v26, %v677_v30 }
 0xf29   :  { %v682_v5 = vsel %vm681_vm2, %v836_v26, %v678_v33 }
 0xf2a   :  { %v687_v7 = vsel %vm684_vm3, %v686_v34, %v682_v5 }
 0xf2b   :  { %v693_v8 = vmul.f32 %v692_v6, %v687_v7  ;;  %v723_v12 = vsub.f32 1.0, %v687_v7 }
 0xf2d   :  { %785 = vmatmul.msk.f32.vlgmr.msra.gmra.mxu1 %vm84_vm4, %v693_v8 }
 0xfaa   :  { %v714_v35 = vpop.f32.mrf.mxu1 }
 0xfab   :  { %718 = vrot.lane.b32.xlu0 %v714_v35, %s881_s3 }
0x101d   :  { %v719_v9 = vpop.permute.xlu0 %718 }
0x101e   :  { %v721_v10 = vadd.f32 %v719_v9, %v645_v20 }
0x1020   :  { %837 = vtanh.f32 %v721_v10 }
0x1026   :  { %v838_v11 = vpop.eup %837 }
0x1027   :  { %725 = vrot.lane.b32.xlu1 %v838_v11, %s881_s3 }
0x1099   :  { %v726_v36 = vpop.permute.xlu1 %725 }
0x109a   :  { %v728_v37 = vmul.f32 %v726_v36, %v723_v12 }
0x109c   :  { %v729_v38 = vadd.f32 %v728_v37, %v693_v8 }
0x109e   :  { %731 = vst.msk [vmem:[#allocation4] sm:$0x1] %vm730_vm5, %v729_v38 }
0x109f   :  { %742 = dma.vmem_to_hbm [thread:$0]  %s738_s19, 16, %s740_s0, [#allocation5]  }
0x10a0   :  { %877 = dma.done.wait [#allocation5], 16  }
0x10a1   :  { %878 = vsyncadd [#allocation5], 4294967280 }
0x10a2   :  { %747 = vsyncpa [#allocation5], 1 }

</bundles_post_ra>
